<compile_context>
chip_gen: v6e
topology: v6e:2x2x1
jax: 0.10.0
libtpu: 0.0.40
codegen_flags: <defaults>
</compile_context>

<pallas_src>
import functools

import jax
import jax.numpy as jnp
from jax import lax
from jax.experimental import pallas as pl
from jax.experimental.pallas import tpu as pltpu


# ----------------------------------------------------------------------------
# Kernel 1: fused ASPP (all conv branches + projection) per row-block tile
# ----------------------------------------------------------------------------
def _aspp_fused_kernel(x_hbm, w0_ref, w1_ref, w2_ref, w3_ref,
                       scales_ref, biases_ref, wproj_ref, pooled_ref,
                       scale_p_ref, bias_p_ref, o_ref,
                       win_buf, sem,
                       *, rates, dmax, tile_h, wp, win_rows, s_outer):
    cin = w0_ref.shape[0]
    m = tile_h * wp                        # wide rows per step (incl. crop cols)
    base = dmax * wp + dmax                # window offset of the centre tap
    cdt = w0_ref.dtype                     # matmul compute dtype (bf16)

    o = pl.program_id(0)
    j = pl.program_id(1)
    n_inner = pl.num_programs(1)
    img = o // s_outer                     # image index
    chunk = o % s_outer                    # row-chunk owned by this outer step

    def window_copy(j_, slot):
        rb = chunk * n_inner + j_
        row0 = rb * (tile_h * wp)
        return pltpu.make_async_copy(
            x_hbm.at[img, pl.ds(row0, win_rows), :],
            win_buf.at[slot], sem.at[slot])

    # Prime the double buffer on the first inner step of every outer step
    # (every core executes its own inner index 0, so this is sharding-safe).
    @pl.when(j == 0)
    def _prime():
        window_copy(0, 0).start()

    slot = j % 2
    window_copy(j, slot).wait()

    # Prefetch the next row-block window while computing the current one.
    @pl.when(j + 1 < n_inner)
    def _prefetch():
        window_copy(j + 1, 1 - slot).start()

    def tap(off):
        # Contiguous row-offset slice of the flattened window (no reshape).
        return win_buf[slot, pl.ds(off, m), :]

    def bn_relu(z, b):
        return jnp.maximum(z * scales_ref[b] + biases_ref[b], 0.0)

    # Centre tap is shared by branch 0 and the centre of every dilated branch.
    center = tap(base)

    # --- branch 0: 1x1 conv + BN + ReLU, immediately projected ---------------
    z = jnp.dot(center, w0_ref[...], preferred_element_type=jnp.float32)
    br = bn_relu(z, 0)
    acc = jnp.dot(br.astype(cdt), wproj_ref[0],
                  preferred_element_type=jnp.float32)

    # --- branches 1-3: dilated 3x3 conv + BN + ReLU, projected ---------------
    for bi, (d, wref) in enumerate(zip(rates, (w1_ref, w2_ref, w3_ref)), 1):
        z = None
        for ky in range(3):
            for kx in range(3):
                op = center if (ky == 1 and kx == 1) else tap(
                    base + (ky - 1) * d * wp + (kx - 1) * d)
                c = jnp.dot(op, wref[3 * ky + kx],
                            preferred_element_type=jnp.float32)
                z = c if z is None else z + c
        br = bn_relu(z, bi)
        acc = acc + jnp.dot(br.astype(cdt), wproj_ref[bi],
                            preferred_element_type=jnp.float32)

    # --- branch 4 (global pool): spatially constant -> per-image bias --------
    acc = acc + pooled_ref[0]

    # --- projection BN + ReLU (Dropout(0.1) is identity in eval mode) --------
    y = jnp.maximum(acc * scale_p_ref[...] + bias_p_ref[...], 0.0)
    o_ref[0] = y.astype(o_ref.dtype)


def aspp_fused(xp_flat, w0, w_dil, scales, biases, w_proj_main, pooled_bias,
               scale_p, bias_p, *, rates, dmax, tile_h, wp, win_rows,
               s_outer, n_inner, out_dtype, single_buffer_weights):
    n, _, cin = xp_flat.shape
    cout = w0.shape[1]
    tm = tile_h * wp
    nrb = s_outer * n_inner
    nt = n * nrb
    w1, w2, w3 = w_dil

    def const_spec(shape, imap):
        if single_buffer_weights:
            return pl.BlockSpec(shape, imap, pipeline_mode=pl.Buffered(1))
        return pl.BlockSpec(shape, imap)

    # VMEM budget: resident weights (single or double buffered), the 2-slot
    # window scratch, pipelined output blocks and f32 intermediates.
    wf = 1 if single_buffer_weights else 2
    need = (wf * (28 * cin * cout + 4 * cout * cout + 8 * cout) * 2
            + 2 * win_rows * cin * 2
            + 2 * tm * cout * jnp.dtype(out_dtype).itemsize
            + 8 * tm * cout * 4 + 4 * tm * cin * 4)
    try:
        cap = int(pltpu.get_tpu_info().vmem_capacity_bytes)
    except Exception:
        cap = 64 << 20
    vmem_limit = int(min(max(int(need * 1.4) + (4 << 20), 32 << 20),
                         int(0.9 * cap)))

    kernel = functools.partial(
        _aspp_fused_kernel, rates=tuple(rates), dmax=dmax, tile_h=tile_h,
        wp=wp, win_rows=win_rows, s_outer=s_outer)

    return pl.pallas_call(
        kernel,
        out_shape=jax.ShapeDtypeStruct((nt, tm, cout), out_dtype),
        grid_spec=pltpu.PrefetchScalarGridSpec(
            num_scalar_prefetch=0,
            grid=(n * s_outer, n_inner),
            in_specs=[
                pl.BlockSpec(memory_space=pl.ANY),                   # padded x
                const_spec((cin, cout), lambda o, j: (0, 0)),        # w0
                const_spec((9, cin, cout), lambda o, j: (0, 0, 0)),  # w1
                const_spec((9, cin, cout), lambda o, j: (0, 0, 0)),  # w2
                const_spec((9, cin, cout), lambda o, j: (0, 0, 0)),  # w3
                const_spec((4, 1, cout), lambda o, j: (0, 0, 0)),    # scales
                const_spec((4, 1, cout), lambda o, j: (0, 0, 0)),    # biases
                const_spec((4, cout, cout), lambda o, j: (0, 0, 0)), # w_proj
                pl.BlockSpec((1, 1, cout),
                             lambda o, j: (o // s_outer, 0, 0)),     # pooled bias
                const_spec((1, cout), lambda o, j: (0, 0)),          # scale_proj
                const_spec((1, cout), lambda o, j: (0, 0)),          # bias_proj
            ],
            out_specs=pl.BlockSpec((1, tm, cout),
                                   lambda o, j: (o * n_inner + j, 0, 0)),
            scratch_shapes=[
                pltpu.VMEM((2, win_rows, cin), w0.dtype),            # window x2
                pltpu.SemaphoreType.DMA((2,)),
            ]),
        compiler_params=pltpu.CompilerParams(
            dimension_semantics=("parallel", "arbitrary"),
            vmem_limit_bytes=vmem_limit),
    )(xp_flat, w0, w1, w2, w3, scales, biases, w_proj_main, pooled_bias,
      scale_p, bias_p)


# ----------------------------------------------------------------------------
# Kernel 2: global average pool -> 1x1 conv -> ReLU -> pre-projected bias
# (tiled over the spatial axis with a VMEM accumulator)
# ----------------------------------------------------------------------------
def _pool_proj_bias_kernel(x_ref, wpool_ref, wproj_ref, o_ref, acc_ref,
                           *, inv_hw):
    @pl.when(pl.program_id(0) == 0)
    def _init():
        acc_ref[...] = jnp.zeros_like(acc_ref)

    acc_ref[...] += jnp.sum(x_ref[...].astype(jnp.float32), axis=1)

    @pl.when(pl.program_id(0) == pl.num_programs(0) - 1)
    def _finalize():
        mean = acc_ref[...] * inv_hw
        pooled = jnp.maximum(
            jnp.dot(mean, wpool_ref[...], preferred_element_type=jnp.float32),
            0.0)
        o_ref[...] = jnp.dot(pooled.astype(wproj_ref.dtype), wproj_ref[...],
                             preferred_element_type=jnp.float32)


def pool_proj_bias(x_flat, w_pool, w_proj_pool):
    """x_flat: (N, H*W, Cin) in the matmul compute dtype."""
    n, hw, cin = x_flat.shape
    cout = w_pool.shape[1]

    # Zero-pad the spatial axis to a multiple of 128 (zeros do not change the
    # sum; the mean divides by the true H*W), then pick a 256-2048 row tile.
    hw_pad = ((hw + 127) // 128) * 128
    if hw_pad != hw:
        x_flat = jnp.pad(x_flat, ((0, 0), (0, hw_pad - hw), (0, 0)))
    thw = 128
    for cand in (2048, 1024, 512, 256):
        if hw_pad % cand == 0 and n * cand * cin * x_flat.dtype.itemsize <= (8 << 20):
            thw = cand
            break

    kernel = functools.partial(_pool_proj_bias_kernel, inv_hw=1.0 / hw)
    return pl.pallas_call(
        kernel,
        out_shape=jax.ShapeDtypeStruct((n, cout), jnp.float32),
        grid_spec=pltpu.PrefetchScalarGridSpec(
            num_scalar_prefetch=0,
            grid=(hw_pad // thw,),
            in_specs=[
                pl.BlockSpec((n, thw, cin), lambda i: (0, i, 0)),
                pl.BlockSpec((cin, cout), lambda i: (0, 0)),
                pl.BlockSpec((cout, cout), lambda i: (0, 0)),
            ],
            out_specs=pl.BlockSpec((n, cout), lambda i: (0, 0)),
            scratch_shapes=[pltpu.VMEM((n, cin), jnp.float32)],
        ),
        compiler_params=pltpu.CompilerParams(
            dimension_semantics=("arbitrary",)),
    )(x_flat, w_pool, w_proj_pool)


# ----------------------------------------------------------------------------
# Tile selection
# ----------------------------------------------------------------------------
def _pick_tile_h(n_imgs, h, wp, target_rows=1024):
    """Largest divisor of H whose wide row count (tile_h * Wp) fits the target
    (512-1024 rows keeps the MXU cadence and amortizes per-step overhead); for
    a single image keep >= 2 row blocks so the parallel axis can shard across
    TensorCores (v7x megacore)."""
    divs = [d for d in range(1, h + 1) if h % d == 0]
    if n_imgs < 2:
        two_plus = [d for d in divs if h // d >= 2]
        if two_plus:
            divs = two_plus
    fit = [d for d in divs if d * wp <= target_rows]
    return max(fit) if fit else min(divs)


def _pick_outer_split(n_imgs, nrb):
    """Factor the row blocks into (outer, inner) so the 'parallel' outer axis
    has >= 2 steps when possible while keeping a long inner axis for the
    window-prefetch pipeline."""
    if n_imgs >= 2 or nrb == 1:
        return 1
    for s in range(2, nrb + 1):
        if nrb % s == 0:
            return s
    return 1


# ----------------------------------------------------------------------------
# ASPP forward (glue in JAX, all matmuls / BN / ReLU in the kernels above)
# ----------------------------------------------------------------------------
def aspp_forward(x_nchw, params, rates, *, out_channels=256,
                 compute_dtype=jnp.bfloat16, out_dtype=jnp.bfloat16):
    assert len(rates) == 3
    n, cin, h, w = x_nchw.shape
    dmax = max(rates)
    wp = w + 2 * dmax

    x = jnp.transpose(x_nchw, (0, 2, 3, 1)).astype(jnp.float32)      # NHWC f32
    xb = x.astype(compute_dtype)

    # Pad once (top dmax, bottom dmax+1 so the widest tap slice stays in
    # bounds) and flatten the spatial dims: every dilated tap then becomes a
    # contiguous row-offset slice of the in-VMEM window.
    xp = jnp.pad(xb, ((0, 0), (dmax, dmax + 1), (dmax, dmax), (0, 0)))
    hp = h + 2 * dmax + 1
    xp_flat = xp.reshape(n, hp * wp, cin)

    tile_h = _pick_tile_h(n, h, wp)
    nrb = h // tile_h
    s_outer = _pick_outer_split(n, nrb)
    n_inner = nrb // s_outer
    win_rows = (tile_h + 2 * dmax + 1) * wp

    # Weights / folded-BN params in kernel layout.
    w0 = params["w0"].astype(compute_dtype)                          # (Cin, C)
    w_dil = tuple(params[f"w{i + 1}"].reshape(9, cin, out_channels)
                  .astype(compute_dtype) for i in range(3))          # (9,Cin,C)
    scales = jnp.stack([params[f"scale{i}"] for i in range(4)], 0)   # (4,1,C)
    biases = jnp.stack([params[f"bias{i}"] for i in range(4)], 0)    # (4,1,C)
    w_proj = params["w_proj"]                                        # (5C, C)
    w_proj_main = w_proj[:4 * out_channels].reshape(
        4, out_channels, out_channels).astype(compute_dtype)
    w_proj_pool = w_proj[4 * out_channels:].astype(compute_dtype)    # (C, C)

    # Pooling branch (AdaptiveAvgPool -> 1x1 conv -> ReLU; the bilinear resize
    # of a 1x1 map is a broadcast) folded into a per-image projection bias.
    pooled_bias = pool_proj_bias(xb.reshape(n, h * w, cin),
                                 params["w_pool"], w_proj_pool)
    pooled_bias = pooled_bias.reshape(n, 1, out_channels)

    run = functools.partial(
        aspp_fused, xp_flat, w0, w_dil, scales, biases, w_proj_main,
        pooled_bias, params["scale_proj"], params["bias_proj"],
        rates=rates, dmax=dmax, tile_h=tile_h, wp=wp, win_rows=win_rows,
        s_outer=s_outer, n_inner=n_inner, out_dtype=out_dtype)
    try:
        out_wide = jax.block_until_ready(run(single_buffer_weights=True))
    except Exception:
        # Older Pallas versions may reject pl.Buffered(1); fall back to default
        # (double-buffered) residency for the constant weight blocks.
        out_wide = run(single_buffer_weights=False)

    # Crop the 2*dmax garbage columns of the wide-row layout and restore NCHW
    # (the crop fuses with the final relayout in XLA).
    out = out_wide.reshape(n, nrb, tile_h, wp, out_channels)[..., :w, :]
    out = out.reshape(n, h, w, out_channels)
    return jnp.transpose(out, (0, 3, 1, 2))


# ----------------------------------------------------------------------------
# Pure-JAX reference with matching numerics (bf16 matmul operands, f32 accum)
# ----------------------------------------------------------------------------
def aspp_reference(x_nchw, params, rates, out_channels=256,
                   compute_dtype=jnp.bfloat16):
    n, cin, h, w = x_nchw.shape
    x = jnp.transpose(x_nchw, (0, 2, 3, 1)).astype(jnp.float32)
    xb = x.astype(compute_dtype)

    def bn_relu(y, s, b):
        return jnp.maximum(y * s[0] + b[0], 0.0)

    outs = [bn_relu(
        jnp.einsum("nhwc,co->nhwo", xb, params["w0"].astype(compute_dtype),
                   preferred_element_type=jnp.float32),
        params["scale0"], params["bias0"])]
    for i, d in enumerate(rates):
        y = lax.conv_general_dilated(
            xb, params[f"w{i + 1}"].astype(compute_dtype),
            window_strides=(1, 1), padding=[(d, d), (d, d)],
            rhs_dilation=(d, d),
            dimension_numbers=("NHWC", "HWIO", "NHWC"),
            preferred_element_type=jnp.float32)
        outs.append(bn_relu(y, params[f"scale{i + 1}"], params[f"bias{i + 1}"]))
    mean = jnp.mean(xb.astype(jnp.float32), axis=(1, 2))
    pooled = jnp.maximum(mean @ params["w_pool"], 0.0)
    outs.append(jnp.broadcast_to(pooled[:, None, None, :],
                                 (n, h, w, out_channels)))
    cat = jnp.concatenate([o.astype(compute_dtype) for o in outs], axis=-1)
    proj = jnp.einsum("nhwc,co->nhwo", cat,
                      params["w_proj"].astype(compute_dtype),
                      preferred_element_type=jnp.float32)
    proj = bn_relu(proj, params["scale_proj"], params["bias_proj"])
    return jnp.transpose(proj, (0, 3, 1, 2))


# ----------------------------------------------------------------------------
# Deterministic parameter construction
# ----------------------------------------------------------------------------
def make_params(key, in_channels, rates, out_channels=256):
    keys = jax.random.split(key, 32)
    p = {}

    def bn_fold(kg, kb, km, kv, c):
        gamma = 1.0 + 0.1 * jax.random.normal(kg, (c,), jnp.float32)
        beta = 0.1 * jax.random.normal(kb, (c,), jnp.float32)
        mean = 0.1 * jax.random.normal(km, (c,), jnp.float32)
        var = 0.5 + jax.random.uniform(kv, (c,), jnp.float32)
        scale = gamma / jnp.sqrt(var + 1e-5)
        bias = beta - mean * scale
        return scale.reshape(1, c), bias.reshape(1, c)

    p["w0"] = 0.1 * jax.random.normal(
        keys[0], (in_channels, out_channels), jnp.float32)
    p["scale0"], p["bias0"] = bn_fold(keys[1], keys[2], keys[3], keys[4],
                                      out_channels)

    for i, _ in enumerate(rates):
        p[f"w{i + 1}"] = 0.1 * jax.random.normal(
            keys[5 + 5 * i], (3, 3, in_channels, out_channels), jnp.float32)
        p[f"scale{i + 1}"], p[f"bias{i + 1}"] = bn_fold(
            keys[6 + 5 * i], keys[7 + 5 * i], keys[8 + 5 * i], keys[9 + 5 * i],
            out_channels)

    p["w_pool"] = 0.1 * jax.random.normal(
        keys[20], (in_channels, out_channels), jnp.float32)
    p["w_proj"] = 0.05 * jax.random.normal(
        keys[21], (5 * out_channels, out_channels), jnp.float32)
    p["scale_proj"], p["bias_proj"] = bn_fold(
        keys[22], keys[23], keys[24], keys[25], out_channels)
    return p


if __name__ == "__main__":
    key = jax.random.PRNGKey(0)
    kx, kp = jax.random.split(key)

    N, Cin, H, W = 2, 8, 16, 16
    rates = (2, 4, 6)

    x = jax.random.normal(kx, (N, Cin, H, W), jnp.float32)
    params = make_params(kp, Cin, rates)

    ref = jax.block_until_ready(aspp_reference(x, params, rates))

    # f32-output path: tight numerics check against the pure-JAX reference.
    out_f32 = jax.block_until_ready(
        aspp_forward(x, params, rates, out_dtype=jnp.float32))
    assert out_f32.shape == (N, 256, H, W), out_f32.shape
    err = float(jnp.max(jnp.abs(out_f32 - ref)))
    assert err < 2e-2, f"max abs error vs reference (f32 out): {err}"

    # bf16-output path (default; halves result writeback): loose check only,
    # since the final store rounds to bf16.
    out_bf16 = jax.block_until_ready(aspp_forward(x, params, rates))
    err_b = float(jnp.max(jnp.abs(out_bf16.astype(jnp.float32) - ref)))
    assert err_b < 1e-1, f"max abs error vs reference (bf16 out): {err_b}"

    print("KERNEL_OK")
</pallas_src>

<mosaic_0001>
module attributes {stable_mosaic.version = 11 : i64} {
  func.func @_pool_proj_bias_kernel(%arg0: i32, %arg1: memref<2x256x8xbf16, #tpu.memory_space<vmem>>, %arg2: memref<8x256xf32, #tpu.memory_space<vmem>>, %arg3: memref<256x256xbf16, #tpu.memory_space<vmem>>, %arg4: memref<2x256xf32, #tpu.memory_space<vmem>>, %arg5: memref<2x8xf32, #tpu.memory_space<vmem>>) attributes {dimension_semantics = [#tpu.dimension_semantics<arbitrary>], iteration_bounds = array<i64: 1>, scalar_prefetch = 0 : i64, scratch_operands = 1 : i64, tpu.core_type = #tpu.core_type<tc>, window_params = [{transform_indices = @transform_0, window_bounds = array<i64: 2, 256, 8>}, {pipeline_mode = #tpu.pipeline_mode<synchronous>, transform_indices = @transform_1, window_bounds = array<i64: 8, 256>}, {pipeline_mode = #tpu.pipeline_mode<synchronous>, transform_indices = @transform_2, window_bounds = array<i64: 256, 256>}, {pipeline_mode = #tpu.pipeline_mode<synchronous>, transform_indices = @transform_3, window_bounds = array<i64: 2, 256>}]} {
    %c0_i32 = arith.constant 0 : i32
    %0 = arith.cmpi eq, %arg0, %c0_i32 : i32
    %1 = arith.extui %0 : i1 to i32
    %c0_i32_0 = arith.constant 0 : i32
    %2 = arith.cmpi ne, %1, %c0_i32_0 : i32
    scf.if %2 {
      %cst_9 = arith.constant 0.000000e+00 : f32
      %12 = vector.broadcast %cst_9 : f32 to vector<2x8xf32>
      %c0_10 = arith.constant 0 : index
      %c0_11 = arith.constant 0 : index
      %13 = vector.load %arg5[%c0_10, %c0_11] : memref<2x8xf32, #tpu.memory_space<vmem>>, vector<2x8xf32>
      tpu.vector_store %arg5[%c0_10, %c0_11], %12 {strides = array<i32>} : memref<2x8xf32, #tpu.memory_space<vmem>>, vector<2x8xf32>,
    } else {
    }
    %c0 = arith.constant 0 : index
    %c0_1 = arith.constant 0 : index
    %3 = vector.load %arg5[%c0, %c0_1] : memref<2x8xf32, #tpu.memory_space<vmem>>, vector<2x8xf32>
    %c0_2 = arith.constant 0 : index
    %c0_3 = arith.constant 0 : index
    %c0_4 = arith.constant 0 : index
    %4 = vector.load %arg1[%c0_2, %c0_3, %c0_4] : memref<2x256x8xbf16, #tpu.memory_space<vmem>>, vector<2x256x8xbf16>
    %5 = arith.extf %4 : vector<2x256x8xbf16> to vector<2x256x8xf32>
    %cst = arith.constant dense<0.000000e+00> : vector<2x8xf32>
    %6 = vector.multi_reduction <add>, %5, %cst [1] : vector<2x256x8xf32> to vector<2x8xf32>
    %7 = arith.addf %3, %6 : vector<2x8xf32>
    %c0_5 = arith.constant 0 : index
    %c0_6 = arith.constant 0 : index
    %8 = vector.load %arg5[%c0_5, %c0_6] : memref<2x8xf32, #tpu.memory_space<vmem>>, vector<2x8xf32>
    tpu.vector_store %arg5[%c0_5, %c0_6], %7 {strides = array<i32>} : memref<2x8xf32, #tpu.memory_space<vmem>>, vector<2x8xf32>,
    %c0_i32_7 = arith.constant 0 : i32
    %9 = arith.cmpi eq, %arg0, %c0_i32_7 : i32
    %10 = arith.extui %9 : i1 to i32
    %c0_i32_8 = arith.constant 0 : i32
    %11 = arith.cmpi ne, %10, %c0_i32_8 : i32
    scf.if %11 {
      %c0_9 = arith.constant 0 : index
      %c0_10 = arith.constant 0 : index
      %12 = vector.load %arg5[%c0_9, %c0_10] : memref<2x8xf32, #tpu.memory_space<vmem>>, vector<2x8xf32>
      %cst_11 = arith.constant 3.906250e-03 : f32
      %13 = vector.broadcast %cst_11 : f32 to vector<2x8xf32>
      %14 = arith.mulf %12, %13 : vector<2x8xf32>
      %c0_12 = arith.constant 0 : index
      %c0_13 = arith.constant 0 : index
      %15 = vector.load %arg2[%c0_12, %c0_13] : memref<8x256xf32, #tpu.memory_space<vmem>>, vector<8x256xf32>
      %cst_14 = arith.constant dense<0.000000e+00> : vector<2x256xf32>
      %16 = tpu.matmul %14, %15, %cst_14 {dimension_numbers = #tpu.dot_dimension_numbers<[1], [0], [0], [1], [0, 0, 1, 1], [], []>} : vector<2x8xf32>, vector<8x256xf32>, vector<2x256xf32> -> vector<2x256xf32>
      %cst_15 = arith.constant 0.000000e+00 : f32
      %17 = vector.broadcast %cst_15 : f32 to vector<2x256xf32>
      %18 = arith.maximumf %16, %17 : vector<2x256xf32>
      %19 = arith.truncf %18 : vector<2x256xf32> to vector<2x256xbf16>
      %c0_16 = arith.constant 0 : index
      %c0_17 = arith.constant 0 : index
      %20 = vector.load %arg3[%c0_16, %c0_17] : memref<256x256xbf16, #tpu.memory_space<vmem>>, vector<256x256xbf16>
      %cst_18 = arith.constant dense<0.000000e+00> : vector<2x256xf32>
      %21 = tpu.matmul %19, %20, %cst_18 {dimension_numbers = #tpu.dot_dimension_numbers<[1], [0], [0], [1], [0, 0, 1, 1], [], []>} : vector<2x256xbf16>, vector<256x256xbf16>, vector<2x256xf32> -> vector<2x256xf32>
      %c0_19 = arith.constant 0 : index
      %c0_20 = arith.constant 0 : index
      %22 = vector.load %arg4[%c0_19, %c0_20] : memref<2x256xf32, #tpu.memory_space<vmem>>, vector<2x256xf32>
      tpu.vector_store %arg4[%c0_19, %c0_20], %21 {strides = array<i32>} : memref<2x256xf32, #tpu.memory_space<vmem>>, vector<2x256xf32>,
    } else {
    }
    return
  }
  func.func @transform_0(%arg0: i32) -> (i32, i32, i32) {
    %c0_i32 = arith.constant 0 : i32
    %c0_i32_0 = arith.constant 0 : i32
    %c0_i32_1 = arith.constant 0 : i32
    return %c0_i32, %arg0, %c0_i32_0 : i32, i32, i32
  }
  func.func @transform_1(%arg0: i32) -> (i32, i32) {
    %c0_i32 = arith.constant 0 : i32
    %c0_i32_0 = arith.constant 0 : i32
    %c0_i32_1 = arith.constant 0 : i32
    return %c0_i32, %c0_i32_0 : i32, i32
  }
  func.func @transform_2(%arg0: i32) -> (i32, i32) {
    %c0_i32 = arith.constant 0 : i32
    %c0_i32_0 = arith.constant 0 : i32
    %c0_i32_1 = arith.constant 0 : i32
    return %c0_i32, %c0_i32_0 : i32, i32
  }
  func.func @transform_3(%arg0: i32) -> (i32, i32) {
    %c0_i32 = arith.constant 0 : i32
    %c0_i32_0 = arith.constant 0 : i32
    %c0_i32_1 = arith.constant 0 : i32
    return %c0_i32, %c0_i32_0 : i32, i32
  }
}

</mosaic_0001>

<bundles_post_ra>
// kernel: tpu_custom_call.1
= control target key start
LH: loop header
LB: loop body
LE: loop exit
PB: predicated region body
PF: predicated region fallthrough
CT: control target
= control target key end

     0   :  { %vm19_vm0 = vcmask 58368   ;;  %v906_v2 = vmov 0.0   ;;  %vm150_vm1 = vcmask 64512   ;;  %s1196_s0 = inlined_call_operand.vmem [shape: bf16[2,256,8], index: 0, kind: input, shape index: {}]   ;;  %s1197_s1 = inlined_call_operand.vmem [shape: f32[8,256], index: 1, kind: input, shape index: {}]   ;;  %s1198_s2 = inlined_call_operand.vmem [shape: bf16[256,256], index: 2, kind: input, shape index: {}]   ;;  %s1199_s3 = inlined_call_operand.hbm [shape: f32[2,256], index: 3, kind: output, shape index: {}]  }
   0x1   :  { %v303_v0 = vld [vmem:[%s1197_s1 + $0x8] sm:$0xff]  ;;  %v302_v1 = vld [vmem:[%s1197_s1] sm:$0xff]  ;;  %20 = vst.msk [vmem:[#allocation2] sm:$0x3] %vm19_vm0, %v906_v2  ;;  %371 = vmatprep.mubr.f32.mxu0 %v906_v2  ;;  %v836_v5 = vld [vmem:[%s1198_s2 + $0x74] ss:$8 sps:$4 sm:$0xff]  }
   0x2   :  { %337 = vmatprep.subr.mxu0 %v303_v0  ;;  %v676_v3 = vld [vmem:[%s1196_s0] sm:$0xff]   ;;  %v803_v4 = vld [vmem:[%s1196_s0 + $0x8] sm:$0xff]   ;;  %v838_v6 = vld [vmem:[%s1198_s2 + $0x70] ss:$8 sps:$4 sm:$0xff]   ;;  %574 = vmatprep.subr.bf16.mxu1 %v836_v5 }
   0x3   :  { %338 = vmatpush1.msra.mxu0 %v302_v1  ;;  %v677_v7 = vunpack.c.l.bf16 %v676_v3  ;;  %v678_v8 = vunpack.c.h.bf16 %v676_v3  ;;  %v839_v9 = vld [vmem:[%s1198_s2 + $0x64] ss:$8 sps:$4 sm:$0xff]   ;;  %v681_v10 = vunpack.c.l.bf16 %v803_v4  ;;  %v804_v11 = vld [vmem:[%s1196_s0 + $0x10] sm:$0xff]   ;;  %v682_v12 = vunpack.c.h.bf16 %v803_v4  ;;  %575 = vmatpush1.bf16.msra.mxu1 %v838_v6  ;;  %v841_v13 = vld [vmem:[%s1198_s2 + $0x60] ss:$8 sps:$4 sm:$0xff]  }
   0x4   :  { %576 = vmatprep.subr.bf16.mxu1 %v839_v9  ;;  %v842_v14 = vld [vmem:[%s1198_s2 + $0x54] ss:$8 sps:$4 sm:$0xff]   ;;  %v685_v15 = vunpack.c.l.bf16 %v804_v11  ;;  %v818_v19 = vld [vmem:[%s1196_s0 + $0x80] sm:$0xff]   ;;  %v686_v22 = vunpack.c.h.bf16 %v804_v11  ;;  %v844_v24 = vld [vmem:[%s1198_s2 + $0x50] ss:$8 sps:$4 sm:$0xff]  }
   0x5   :  { %v151_v16 = vsel %vm150_vm1, %v677_v7, 0.0  ;;  %v152_v17 = vsel %vm150_vm1, %v678_v8, 0.0  ;;  %v805_v18 = vld [vmem:[%s1196_s0 + $0x18] sm:$0xff]   ;;  %v154_v21 = vsel %vm150_vm1, %v681_v10, 0.0  ;;  %v156_v23 = vsel %vm150_vm1, %v682_v12, 0.0  ;;  %v819_v25 = vld [vmem:[%s1196_s0 + $0x88] sm:$0xff]  }
   0x6   :  { %v153_v20 = vadd.f32 %v152_v17, %v151_v16  ;;  %v845_v27 = vld [vmem:[%s1198_s2 + $0x44] ss:$8 sps:$4 sm:$0xff]   ;;  %v689_v28 = vunpack.c.l.bf16 %v805_v18  ;;  %v158_v29 = vsel %vm150_vm1, %v685_v15, 0.0  ;;  %v741_v31 = vunpack.c.l.bf16 %v818_v19  ;;  %v847_v37 = vld [vmem:[%s1198_s2 + $0x40] ss:$8 sps:$4 sm:$0xff]   ;;  %v820_v38 = vld [vmem:[%s1196_s0 + $0x90] sm:$0xff]  }
   0x7   :  { %577 = vmatpush1.bf16.msra.mxu1 %v841_v13  ;;  %v806_v30 = vld [vmem:[%s1196_s0 + $0x20] sm:$0xff]   ;;  %v690_v33 = vunpack.c.h.bf16 %v805_v18  ;;  %v742_v34 = vunpack.c.h.bf16 %v818_v19  ;;  %v745_v35 = vunpack.c.l.bf16 %v819_v25  ;;  %v160_v36 = vsel %vm150_vm1, %v686_v22, 0.0  ;;  %v848_v40 = vld [vmem:[%s1198_s2 + $0x34] ss:$8 sps:$4 sm:$0xff]   ;;  %v807_v42 = vld [vmem:[%s1196_s0 + $0x28] sm:$0xff]  }
   0x8   :  { %v155_v26 = vadd.f32 %v154_v21, %v153_v20  ;;  %578 = vmatprep.subr.bf16.mxu1 %v842_v14  ;;  %v693_v41 = vunpack.c.l.bf16 %v806_v30  ;;  %v746_v43 = vunpack.c.h.bf16 %v819_v25  ;;  %v162_v44 = vsel %vm150_vm1, %v689_v28, 0.0  ;;  %v821_v49 = vld [vmem:[%s1196_s0 + $0x98] sm:$0xff]   ;;  %v851_v56 = vld [vmem:[%s1198_s2 + $0x24] ss:$8 sps:$4 sm:$0xff]   ;;  %v808_v61 = vld [vmem:[%s1196_s0 + $0x30] sm:$0xff]  }
   0x9   :  { %v694_v45 = vunpack.c.h.bf16 %v806_v30  ;;  %v220_v47 = vsel %vm150_vm1, %v741_v31, 0.0  ;;  %v749_v48 = vunpack.c.l.bf16 %v820_v38  ;;  %v164_v50 = vsel %vm150_vm1, %v690_v33, 0.0  ;;  %v850_v53 = vld [vmem:[%s1198_s2 + $0x30] ss:$8 sps:$4 sm:$0xff]   ;;  %v822_v2 = vld [vmem:[%s1196_s0 + $0xa0] sm:$0xff]   ;;  %v823_v18 = vld [vmem:[%s1196_s0 + $0xa8] sm:$0xff]  }
   0xa   :  { %v157_v32 = vadd.f32 %v156_v23, %v155_v26  ;;  %v221_v51 = vsel %vm150_vm1, %v742_v34, 0.0  ;;  %v223_v52 = vsel %vm150_vm1, %v745_v35, 0.0  ;;  %v697_v57 = vunpack.c.l.bf16 %v807_v42  ;;  %v853_v5 = vld [vmem:[%s1198_s2 + $0x20] ss:$8 sps:$4 sm:$0xff]   ;;  %v854_v8 = vld [vmem:[%s1198_s2 + $0x14] ss:$8 sps:$4 sm:$0xff]  }
   0xb   :  { %579 = vmatpush1.bf16.msra.mxu1 %v844_v24  ;;  %v222_v55 = vadd.f32 %v221_v51, %v220_v47  ;;  %v750_v58 = vunpack.c.h.bf16 %v820_v38  ;;  %v166_v59 = vsel %vm150_vm1, %v693_v41, 0.0  ;;  %v225_v60 = vsel %vm150_vm1, %v746_v43, 0.0  ;;  %v809_v13 = vld [vmem:[%s1196_s0 + $0x38] sm:$0xff]   ;;  %v857_v24 = vld [vmem:[%s1198_s2 + $0x4] ss:$8 sps:$4 sm:$0xff]  }
   0xc   :  { %v159_v39 = vadd.f32 %v158_v29, %v157_v32  ;;  %580 = vmatprep.subr.bf16.mxu1 %v845_v27  ;;  %v698_v0 = vunpack.c.h.bf16 %v807_v42  ;;  %v753_v1 = vunpack.c.l.bf16 %v821_v49  ;;  %v168_v3 = vsel %vm150_vm1, %v694_v45, 0.0  ;;  %v856_v21 = vld [vmem:[%s1198_s2 + $0x10] ss:$8 sps:$4 sm:$0xff]   ;;  %v810_v26 = vld [vmem:[%s1196_s0 + $0x40] sm:$0xff]  }
   0xd   :  { %v224_v63 = vadd.f32 %v223_v52, %v222_v55  ;;  %v227_v4 = vsel %vm150_vm1, %v749_v48, 0.0  ;;  %v701_v9 = vunpack.c.l.bf16 %v808_v61  ;;  %v754_v10 = vunpack.c.h.bf16 %v821_v49 }
   0xe   :  { %v161_v46 = vadd.f32 %v160_v36, %v159_v39  ;;  %v170_v11 = vsel %vm150_vm1, %v697_v57, 0.0  ;;  %v229_v12 = vsel %vm150_vm1, %v750_v58, 0.0  ;;  %v702_v16 = vunpack.c.h.bf16 %v808_v61 }
   0xf   :  { %581 = vmatpush1.bf16.msra.mxu1 %v847_v37  ;;  %v226_v7 = vadd.f32 %v225_v60, %v224_v63  ;;  %v757_v17 = vunpack.c.l.bf16 %v822_v2  ;;  %v172_v19 = vsel %vm150_vm1, %v698_v0, 0.0  ;;  %v231_v20 = vsel %vm150_vm1, %v753_v1, 0.0 }
  0x10   :  { %v163_v54 = vadd.f32 %v162_v44, %v161_v46  ;;  %582 = vmatprep.subr.bf16.mxu1 %v848_v40  ;;  %v705_v25 = vunpack.c.l.bf16 %v809_v13  ;;  %v758_v27 = vunpack.c.h.bf16 %v822_v2  ;;  %v174_v28 = vsel %vm150_vm1, %v701_v9, 0.0 }
  0x11   :  { %v228_v15 = vadd.f32 %v227_v4, %v226_v7  ;;  %v233_v29 = vsel %vm150_vm1, %v754_v10, 0.0 }
  0x12   :  { %v165_v62 = vadd.f32 %v164_v50, %v163_v54 }
  0x13   :  { %583 = vmatpush1.bf16.msra.mxu1 %v850_v53  ;;  %v230_v23 = vadd.f32 %v229_v12, %v228_v15 }
  0x14   :  { %v167_v6 = vadd.f32 %v166_v59, %v165_v62  ;;  %584 = vmatprep.subr.bf16.mxu1 %v851_v56 }
  0x15   :  { %v232_v31 = vadd.f32 %v231_v20, %v230_v23 }
  0x16   :  { %v169_v14 = vadd.f32 %v168_v3, %v167_v6 }
  0x17   :  { %585 = vmatpush1.bf16.msra.mxu1 %v853_v5 }
  0x18   :  { %v171_v22 = vadd.f32 %v170_v11, %v169_v14  ;;  %586 = vmatprep.subr.bf16.mxu1 %v854_v8 }
  0x1a   :  { %v173_v30 = vadd.f32 %v172_v19, %v171_v22 }
  0x1b   :  { %8 = vsyncpa [#allocation4], 0  ;;  %v706_v32 = vunpack.c.h.bf16 %v809_v13  ;;  %v761_v33 = vunpack.c.l.bf16 %v823_v18  ;;  %v176_v34 = vsel %vm150_vm1, %v702_v16, 0.0  ;;  %v235_v35 = vsel %vm150_vm1, %v757_v17, 0.0  ;;  %587 = vmatpush1.bf16.msra.mxu1 %v856_v21  ;;  %v859_v36 = vld [vmem:[%s1198_s2] ss:$8 sps:$4 sm:$0xff]  }
  0x1c   :  { %v824_v37 = vld [vmem:[%s1196_s0 + $0xb0] sm:$0xff]   ;;  %v175_v38 = vadd.f32 %v174_v28, %v173_v30  ;;  %v234_v39 = vadd.f32 %v233_v29, %v232_v31  ;;  %588 = vmatprep.subr.bf16.mxu1 %v857_v24  ;;  %v709_v41 = vunpack.c.l.bf16 %v810_v26  ;;  %v762_v42 = vunpack.c.h.bf16 %v823_v18  ;;  %v811_v45 = vld [vmem:[%s1196_s0 + $0x48] sm:$0xff]   ;;  %v825_v53 = vld [vmem:[%s1196_s0 + $0xb8] sm:$0xff]   ;;  %s907_s30 = smov [#allocation3]  }
  0x1d   :  { %v860_v40 = vld [vmem:[%s1198_s2 + $0xf4] ss:$8 sps:$4 sm:$0xff]   ;;  %v178_v43 = vsel %vm150_vm1, %v705_v25, 0.0  ;;  %v237_v44 = vsel %vm150_vm1, %v758_v27, 0.0  ;;  %v710_v48 = vunpack.c.h.bf16 %v810_v26  ;;  %v765_v49 = vunpack.c.l.bf16 %v824_v37  ;;  %v862_v52 = vld [vmem:[%s1198_s2 + $0xf0] ss:$8 sps:$4 sm:$0xff]  }
  0x1e   :  { %v177_v46 = vadd.f32 %v176_v34, %v175_v38  ;;  %v236_v47 = vadd.f32 %v235_v35, %v234_v39  ;;  %v180_v50 = vsel %vm150_vm1, %v706_v32, 0.0  ;;  %v239_v51 = vsel %vm150_vm1, %v761_v33, 0.0  ;;  %v863_v56 = vld [vmem:[%s1198_s2 + $0xe4] ss:$8 sps:$4 sm:$0xff]   ;;  %v812_v61 = vld [vmem:[%s1196_s0 + $0x50] sm:$0xff]   ;;  %v813_v13 = vld [vmem:[%s1196_s0 + $0x58] sm:$0xff]  }
  0x1f   :  { %589 = vmatpush1.bf16.msra.mxu1 %v859_v36  ;;  %v713_v57 = vunpack.c.l.bf16 %v811_v45  ;;  %v766_v58 = vunpack.c.h.bf16 %v824_v37  ;;  %v182_v59 = vsel %vm150_vm1, %v709_v41, 0.0  ;;  %v241_v60 = vsel %vm150_vm1, %v762_v42, 0.0  ;;  %v865_v4 = vld [vmem:[%s1198_s2 + $0xe0] ss:$8 sps:$4 sm:$0xff]   ;;  %v866_v8 = vld [vmem:[%s1198_s2 + $0xd4] ss:$8 sps:$4 sm:$0xff]  }
  0x20   :  { %v179_v54 = vadd.f32 %v178_v43, %v177_v46  ;;  %v238_v55 = vadd.f32 %v237_v44, %v236_v47  ;;  %590 = vmatprep.subr.bf16.mxu1 %v860_v40  ;;  %v714_v0 = vunpack.c.h.bf16 %v811_v45  ;;  %v769_v1 = vunpack.c.l.bf16 %v825_v53  ;;  %v826_v5 = vld [vmem:[%s1196_s0 + $0xc0] sm:$0xff]   ;;  %v868_v20 = vld [vmem:[%s1198_s2 + $0xd0] ss:$8 sps:$4 sm:$0xff]   ;;  %v827_v21 = vld [vmem:[%s1196_s0 + $0xc8] sm:$0xff]   ;;  %s633_s4 = sshll.u32 %s907_s30, 4  ;;  %s634_s4 = int_to_ptr.vmem [resolvable:$true] %s633_s4 }
  0x21   :  { %v184_v2 = vsel %vm150_vm1, %v710_v48, 0.0  ;;  %v243_v3 = vsel %vm150_vm1, %v765_v49, 0.0  ;;  %v717_v9 = vunpack.c.l.bf16 %v812_v61  ;;  %v770_v10 = vunpack.c.h.bf16 %v825_v53  ;;  %v869_v24 = vld [vmem:[%s1198_s2 + $0xc4] ss:$8 sps:$4 sm:$0xff]   ;;  %v871_v36 = vld [vmem:[%s1198_s2 + $0xc0] ss:$8 sps:$4 sm:$0xff]   ;;  %p889_p1 = scmp.lt.s32.totalorder %s634_s4, %s634_s4 }
  0x22   :  { %v181_v62 = vadd.f32 %v180_v50, %v179_v54  ;;  %v240_v63 = vadd.f32 %v239_v51, %v238_v55  ;;  %v186_v11 = vsel %vm150_vm1, %v713_v57, 0.0  ;;  %v245_v12 = vsel %vm150_vm1, %v766_v58, 0.0  ;;  %v814_v29 = vld [vmem:[%s1196_s0 + $0x60] sm:$0xff]   ;;  %v828_v37 = vld [vmem:[%s1196_s0 + $0xd0] sm:$0xff]   ;;  %v815_v45 = vld [vmem:[%s1196_s0 + $0x68] sm:$0xff]  }
  0x23   :  { %591 = vmatpush2.bf16.msra.mxu1 %v862_v52  ;;  %v718_v16 = vunpack.c.h.bf16 %v812_v61  ;;  %v773_v17 = vunpack.c.l.bf16 %v826_v5  ;;  %v188_v18 = vsel %vm150_vm1, %v714_v0, 0.0  ;;  %v247_v19 = vsel %vm150_vm1, %v769_v1, 0.0  ;;  %v872_v40 = vld [vmem:[%s1198_s2 + $0xb4] ss:$8 sps:$4 sm:$0xff]   ;;  %v874_v52 = vld [vmem:[%s1198_s2 + $0xb0] ss:$8 sps:$4 sm:$0xff]  }
  0x24   :  { %v183_v6 = vadd.f32 %v182_v59, %v181_v62  ;;  %v242_v7 = vadd.f32 %v241_v60, %v240_v63  ;;  %592 = vmatprep.subr.bf16.mxu1 %v863_v56  ;;  %v721_v25 = vunpack.c.l.bf16 %v813_v13  ;;  %v774_v26 = vunpack.c.h.bf16 %v826_v5  ;;  %v829_v53 = vld [vmem:[%s1196_s0 + $0xd8] sm:$0xff]   ;;  %v875_v56 = vld [vmem:[%s1198_s2 + $0xa4] ss:$8 sps:$4 sm:$0xff]   ;;  %v816_v61 = vld [vmem:[%s1196_s0 + $0x70] sm:$0xff]  }
  0x25   :  { %v190_v27 = vsel %vm150_vm1, %v717_v9, 0.0  ;;  %v249_v28 = vsel %vm150_vm1, %v770_v10, 0.0  ;;  %v722_v32 = vunpack.c.h.bf16 %v813_v13  ;;  %v777_v33 = vunpack.c.l.bf16 %v827_v21  ;;  %v830_v5 = vld [vmem:[%s1196_s0 + $0xe0] sm:$0xff]  }
  0x26   :  { %v185_v14 = vadd.f32 %v184_v2, %v183_v6  ;;  %v244_v15 = vadd.f32 %v243_v3, %v242_v7  ;;  %v192_v34 = vsel %vm150_vm1, %v718_v16, 0.0  ;;  %v251_v35 = vsel %vm150_vm1, %v773_v17, 0.0 }
  0x27   :  { %593 = vmatpush2.bf16.msra.mxu1 %v865_v4  ;;  %v725_v41 = vunpack.c.l.bf16 %v814_v29  ;;  %v778_v42 = vunpack.c.h.bf16 %v827_v21  ;;  %v194_v43 = vsel %vm150_vm1, %v721_v25, 0.0  ;;  %v253_v44 = vsel %vm150_vm1, %v774_v26, 0.0  ;;  %v877_v4 = vld [vmem:[%s1198_s2 + $0xa0] ss:$8 sps:$4 sm:$0xff]  }
  0x28   :  { %v187_v22 = vadd.f32 %v186_v11, %v185_v14  ;;  %v246_v23 = vadd.f32 %v245_v12, %v244_v15  ;;  %594 = vmatprep.subr.bf16.mxu1 %v866_v8  ;;  %v726_v48 = vunpack.c.h.bf16 %v814_v29  ;;  %v781_v49 = vunpack.c.l.bf16 %v828_v37  ;;  %v817_v12 = vld [vmem:[%s1196_s0 + $0x78] sm:$0xff]  }
  0x29   :  { %v196_v50 = vsel %vm150_vm1, %v722_v32, 0.0  ;;  %v255_v51 = vsel %vm150_vm1, %v777_v33, 0.0  ;;  %v729_v57 = vunpack.c.l.bf16 %v815_v45  ;;  %v782_v58 = vunpack.c.h.bf16 %v828_v37  ;;  %v832_v32 = vld [vmem:[%s1196_s0 + $0xf0] sm:$0xff]  }
  0x2a   :  { %v189_v30 = vadd.f32 %v188_v18, %v187_v22  ;;  %v248_v31 = vadd.f32 %v247_v19, %v246_v23  ;;  %v198_v59 = vsel %vm150_vm1, %v725_v41, 0.0  ;;  %v257_v60 = vsel %vm150_vm1, %v778_v42, 0.0  ;;  %v831_v19 = vld [vmem:[%s1196_s0 + $0xe8] sm:$0xff]  }
  0x2b   :  { %595 = vmatpush2.bf16.msra.mxu1 %v868_v20  ;;  %v730_v0 = vunpack.c.h.bf16 %v815_v45  ;;  %v785_v1 = vunpack.c.l.bf16 %v829_v53  ;;  %v200_v2 = vsel %vm150_vm1, %v726_v48, 0.0  ;;  %v259_v3 = vsel %vm150_vm1, %v781_v49, 0.0 }
  0x2c   :  { %v191_v38 = vadd.f32 %v190_v27, %v189_v30  ;;  %v250_v39 = vadd.f32 %v249_v28, %v248_v31  ;;  %596 = vmatprep.subr.bf16.mxu1 %v869_v24  ;;  %v733_v8 = vunpack.c.l.bf16 %v816_v61  ;;  %v786_v9 = vunpack.c.h.bf16 %v829_v53 }
  0x2d   :  { %v202_v10 = vsel %vm150_vm1, %v729_v57, 0.0  ;;  %v261_v11 = vsel %vm150_vm1, %v782_v58, 0.0  ;;  %v734_v15 = vunpack.c.h.bf16 %v816_v61  ;;  %v789_v16 = vunpack.c.l.bf16 %v830_v5 }
  0x2e   :  { %v193_v46 = vadd.f32 %v192_v34, %v191_v38  ;;  %v252_v47 = vadd.f32 %v251_v35, %v250_v39  ;;  %v204_v17 = vsel %vm150_vm1, %v730_v0, 0.0  ;;  %v263_v18 = vsel %vm150_vm1, %v785_v1, 0.0 }
  0x2f   :  { %597 = vmatpush2.bf16.msra.mxu1 %v871_v36  ;;  %v737_v22 = vunpack.c.l.bf16 %v817_v12  ;;  %v790_v23 = vunpack.c.h.bf16 %v830_v5  ;;  %v206_v24 = vsel %vm150_vm1, %v733_v8, 0.0  ;;  %v265_v25 = vsel %vm150_vm1, %v786_v9, 0.0  ;;  %v21_v8 = vld [vmem:[#allocation2] sm:$0x3] }
  0x30   :  { %v195_v54 = vadd.f32 %v194_v43, %v193_v46  ;;  %v254_v55 = vadd.f32 %v253_v44, %v252_v47  ;;  %598 = vmatprep.subr.bf16.mxu1 %v872_v40  ;;  %v738_v28 = vunpack.c.h.bf16 %v817_v12  ;;  %v793_v29 = vunpack.c.l.bf16 %v831_v19  ;;  %v833_v43 = vld [vmem:[%s1196_s0 + $0xf8] sm:$0xff]  }
  0x31   :  { %v208_v30 = vsel %vm150_vm1, %v734_v15, 0.0  ;;  %v267_v31 = vsel %vm150_vm1, %v789_v16, 0.0  ;;  %v794_v35 = vunpack.c.h.bf16 %v831_v19  ;;  %v210_v36 = vsel %vm150_vm1, %v737_v22, 0.0  ;;  %v880_v15 = vld [vmem:[%s1198_s2 + $0x90] ss:$8 sps:$4 sm:$0xff]  }
  0x32   :  { %v197_v62 = vadd.f32 %v196_v50, %v195_v54  ;;  %v256_v63 = vadd.f32 %v255_v51, %v254_v55  ;;  %v269_v37 = vsel %vm150_vm1, %v790_v23, 0.0  ;;  %v797_v40 = vunpack.c.l.bf16 %v832_v32  ;;  %v881_v16 = vld [vmem:[%s1198_s2 + $0x84] ss:$8 sps:$4 sm:$0xff]  }
  0x33   :  { %599 = vmatpush2.bf16.msra.mxu1 %v874_v52  ;;  %v212_v41 = vsel %vm150_vm1, %v738_v28, 0.0  ;;  %v271_v42 = vsel %vm150_vm1, %v793_v29, 0.0  ;;  %v798_v46 = vunpack.c.h.bf16 %v832_v32  ;;  %v273_v47 = vsel %vm150_vm1, %v794_v35, 0.0 }
  0x34   :  { %v199_v6 = vadd.f32 %v198_v59, %v197_v62  ;;  %v258_v7 = vadd.f32 %v257_v60, %v256_v63  ;;  %600 = vmatprep.subr.bf16.mxu1 %v875_v56  ;;  %v801_v50 = vunpack.c.l.bf16 %v833_v43  ;;  %v275_v51 = vsel %vm150_vm1, %v797_v40, 0.0 }
  0x35   :  { %v802_v54 = vunpack.c.h.bf16 %v833_v43  ;;  %v277_v55 = vsel %vm150_vm1, %v798_v46, 0.0  ;;  %vm291_vm2 = vcmask 1041409  }
  0x36   :  { %v201_v13 = vadd.f32 %v200_v2, %v199_v6  ;;  %v260_v14 = vadd.f32 %v259_v3, %v258_v7  ;;  %v279_v58 = vsel %vm150_vm1, %v801_v50, 0.0 }
  0x37   :  { %601 = vmatpush2.bf16.msra.mxu1 %v877_v4  ;;  %v281_v60 = vsel %vm150_vm1, %v802_v54, 0.0 }
  0x38   :  { %v203_v20 = vadd.f32 %v202_v10, %v201_v13  ;;  %v262_v21 = vadd.f32 %v261_v11, %v260_v14  ;;  %v878_v14 = vld [vmem:[%s1198_s2 + $0x94] ss:$8 sps:$4 sm:$0xff]  }
  0x39   :  { %602 = vmatprep.subr.bf16.mxu1 %v878_v14 }
  0x3a   :  { %v205_v26 = vadd.f32 %v204_v17, %v203_v20  ;;  %v264_v27 = vadd.f32 %v263_v18, %v262_v21  ;;  %v883_v17 = vld [vmem:[%s1198_s2 + $0x80] ss:$8 sps:$4 sm:$0xff]   ;;  %s884_s2 = scalar_lea.vmem %s634_s4, 64 }
  0x3b   :  { %603 = vmatpush2.bf16.msra.mxu1 %v880_v15  ;;  %p885_p0 = scmp.ne.s32.totalorder %s634_s4, %s884_s2  ;;  %p890_p2 = scmp.lt.s32.totalorder %s884_s2, %s884_s2 }
  0x3c   :  { %v207_v33 = vadd.f32 %v206_v24, %v205_v26  ;;  %v266_v34 = vadd.f32 %v265_v25, %v264_v27  ;;  %604 = vmatprep.subr.bf16.mxu1 %v881_v16 }
  0x3d   :  { %p891_p3 = por %p890_p2, %p889_p1 }
  0x3e   :  { %v209_v38 = vadd.f32 %v208_v30, %v207_v33  ;;  %v268_v39 = vadd.f32 %v267_v31, %v266_v34 }
  0x3f   :  { %605 = vmatpush2.bf16.msra.mxu1 %v883_v17  ;;  %p892_p4 = pnand %p891_p3, %p885_p0 }
  0x40   :  { %v211_v44 = vadd.f32 %v210_v36, %v209_v38  ;;  %v270_v45 = vadd.f32 %v269_v37, %v268_v39 }
  0x42   :  { %v213_v48 = vadd.f32 %v212_v41, %v211_v44  ;;  %v272_v49 = vadd.f32 %v271_v42, %v270_v45 }
  0x44   :  { %v214_v52 = vrot.slane %v213_v48, 4  ;;  %v274_v53 = vadd.f32 %v273_v47, %v272_v49 }
  0x46   :  { %v215_v56 = vadd.f32 %v214_v52, %v213_v48  ;;  %v276_v57 = vadd.f32 %v275_v51, %v274_v53 }
  0x48   :  { %v278_v59 = vadd.f32 %v277_v55, %v276_v57  ;;  %v216_v61 = vrot.slane %v215_v56, 2 }
  0x4a   :  { %v280_v62 = vadd.f32 %v279_v58, %v278_v59  ;;  %v217_v0 = vadd.f32 %v216_v61, %v215_v56 }
  0x4c   :  { %v282_v63 = vadd.f32 %v281_v60, %v280_v62  ;;  %v218_v3 = vrot.slane %v217_v0, 1 }
  0x4e   :  { %v283_v1 = vrot.slane %v282_v63, 4  ;;  %v219_v6 = vadd.f32 %v218_v3, %v217_v0 }
  0x50   :  { %v284_v2 = vadd.f32 %v283_v1, %v282_v63 }
  0x52   :  { %v285_v4 = vrot.slane %v284_v2, 2 }
  0x54   :  { %v286_v5 = vadd.f32 %v285_v4, %v284_v2 }
  0x56   :  { %v287_v7 = vrot.slane %v286_v5, 1 }
  0x58   :  { %v288_v9 = vadd.f32 %v287_v7, %v286_v5 }
  0x5a   :  { %v292_v10 = vsel %vm291_vm2, %v288_v9, %v219_v6 }
  0x5b   :  { %v294_v11 = vadd.f32 %v292_v10, %v21_v8 }
  0x5d   :  { %296 = vst.msk [vmem:[#allocation2] sm:$0x3] %vm19_vm0, %v294_v11 }
  0x64   :  { %v300_v12 = vld [vmem:[#allocation2] sm:$0x3] }
  0x65   :  { %v301_v13 = vmul.f32 0.00390625, %v300_v12 }
  0x67   :  { %641 = vmatmul.mubr.msk.f32.vlgmr.msra.gmra.mxu0 %vm150_vm1, %v301_v13 }
 0x127   :  { %v373_v18 = vpop.f32.mrf.mxu0 }
 0x128   :  { %v378_v19 = vmax.f32 %v373_v18, 0.0 }
 0x129   :  { %v375_v20 = vpop.f32.mrf.mxu0 }
 0x12a   :  { %v379_v21 = vmax.f32 %v375_v20, 0.0  ;;  %v380_v23 = vpack.c.bf16 %v378_v19, %v378_v19 }
 0x12c   :  { %v381_v22 = vpack.c.bf16 %v379_v21, %v379_v21 }
 0x12e   :  { %606 = vmatprep.mubr.bf16.mxu1 %v381_v22 }
 0x12f   :  { %607 = vmatmul.mubr.bf16.vlgmr.msra.gmra.mxu1 %v380_v23 }
 0x1ef   :  { %v608_v24 = vpop.f32.mrf.mxu1 }
 0x1f1   :  { %v610_v25 = vpop.f32.mrf.mxu1 }
 0x1f2   :  { %v617_v26 = vcombine.low %v608_v24, %v610_v25 }
 0x1f3   :  { %v612_v27 = vpop.f32.mrf.mxu1 }
 0x1f4   :  { %674 = vst.sshfl [vmem:[#allocation3] sm:$0x33 pattern:$0x76325410] %v617_v26 }
 0x1f5   :  { %v613_v28 = vpop.f32.mrf.mxu1 }
 0x1f6   :  { %895 = shalt.err (!%p892_p4)
}
 0x1f7   :  { %636 = dma.vmem_to_hbm [thread:$0]  %s634_s4, 64, %s1199_s3, [#allocation4]  }
 0x1f8   :  { %904 = dma.done.wait [#allocation4], 64  }
 0x1f9   :  { %905 = vsyncadd [#allocation4], 4294967232 }
 0x1fa   :  { %640 = vsyncpa [#allocation4], 1 }

</bundles_post_ra>
